<compile_context>
chip_gen: v7x
topology: tpu7x:2x2x1
jax: 0.10.0
libtpu: 0.0.40
codegen_flags: <defaults>
</compile_context>

<pallas_src>
import functools

import numpy as np
import jax
import jax.numpy as jnp
from jax.experimental import pallas as pl
from jax.experimental.pallas import tpu as pltpu


def tomnet_kernel(x_ref, w1_ref, b_ref, w2_ref, o_ref, *, out_features):
    b = b_ref[...]                                   # (2, FTP) f32
    # Stage 1: Conv1d for the whole tile (K taps + flatten folded into w1).
    #   (N_TILE, C*W) @ (C*W, FTP) -> (N_TILE, FTP), f32 accumulate.
    z1 = jnp.dot(x_ref[...], w1_ref[...],
                 preferred_element_type=jnp.float32) + b[0:1, :]
    r = jnp.maximum(z1, 0.0)                         # ReLU

    # Stage 2: AvgPool1d(F) (1/F selection matrix) fused with Linear.
    #   (N_TILE, FTP) @ (FTP, O) -> (N_TILE, O).  Padded rows of w2 are zero.
    z = jnp.dot(r, w2_ref[...],
                preferred_element_type=jnp.float32) + b[1:2, :out_features]

    # Stage 3: LogSoftmax over dim=1 for the whole tile; one block store.
    m = jnp.max(z, axis=-1, keepdims=True)
    lse = jnp.log(jnp.sum(jnp.exp(z - m), axis=-1, keepdims=True))
    o_ref[...] = (z - m - lse).astype(o_ref.dtype)


def build_tomnet_forward(wconv, bconv, wlin, blin, *, n_tile=32):
    """One-time weight preprocessing; returns a jitted forward(x) -> (N, O).

    All Toeplitz / pooling-fusion / padding work happens here exactly once;
    the returned callable only reshapes x and runs the Pallas kernel.
    """
    wc = np.asarray(wconv, np.float32)               # (F, C, K)
    bc = np.asarray(bconv, np.float32)               # (F,)
    wl = np.asarray(wlin, np.float32)                # (O, T)
    bl = np.asarray(blin, np.float32)                # (O,)

    F, C, K = wc.shape
    O, T = wl.shape
    W = T + K - 1                                    # conv input width
    CW = C * W
    FT = F * T
    FTP = ((FT + 127) // 128) * 128                  # lane-pad 104 -> 128

    # Toeplitz conv weight (flatten folded in), zero-padded on the FT axis:
    #   w1[c*W + (t+j), f*T + t] = Wconv[f, c, j]
    w1 = np.zeros((CW, FTP), np.float32)
    f, c, j, t = np.meshgrid(np.arange(F), np.arange(C), np.arange(K),
                             np.arange(T), indexing="ij")
    w1[c * W + t + j, f * T + t] = wc[f, c, j]

    # AvgPool1d(kernel=F, stride=F) over the flattened axis as a (FT, T)
    # selection matrix (value 1/F), fused into the Linear weight; padded
    # rows stay zero so the FT padding is numerically inert.
    sel = np.zeros((FT, T), np.float32)
    sel[np.arange(FT), np.arange(FT) // F] = 1.0 / F
    w2 = np.zeros((FTP, O), np.float32)
    w2[:FT] = sel @ wl.T                             # (FTP, O)

    # Both biases packed into one constant: row 0 = conv bias broadcast to
    # the flattened layout, row 1 = linear bias in the first O lanes.
    b = np.zeros((2, FTP), np.float32)
    b[0, :FT] = np.repeat(bc, T)
    b[1, :O] = bl

    # Device-resident constants (uploaded once, baked into the executable).
    w1_d = jnp.asarray(w1)
    w2_d = jnp.asarray(w2)
    b_d = jnp.asarray(b)

    kernel = functools.partial(tomnet_kernel, out_features=O)

    @jax.jit
    def forward(x):                                  # x: (N, C, W)
        N = x.shape[0]
        x_flat = x.astype(jnp.float32).reshape(N, CW)
        n_pad = (-N) % n_tile                        # static under jit
        if n_pad:
            x_flat = jnp.pad(x_flat, ((0, n_pad), (0, 0)))
        np_rows = N + n_pad

        out = pl.pallas_call(
            kernel,
            out_shape=jax.ShapeDtypeStruct((np_rows, O), jnp.float32),
            grid=(np_rows // n_tile,),
            in_specs=[
                pl.BlockSpec((n_tile, CW), lambda i: (i, 0)),   # x tile
                pl.BlockSpec((CW, FTP), lambda i: (0, 0)),      # w1 resident
                pl.BlockSpec((2, FTP), lambda i: (0, 0)),       # biases
                pl.BlockSpec((FTP, O), lambda i: (0, 0)),       # w2 resident
            ],
            out_specs=pl.BlockSpec((n_tile, O), lambda i: (i, 0)),
            compiler_params=pltpu.CompilerParams(
                dimension_semantics=("parallel",)),  # v7x: shard over 2 TCs
        )(x_flat, w1_d, b_d, w2_d)
        return out[:N] if n_pad else out

    return forward


def reference(x, wconv, bconv, wlin, blin):
    """Pure-JAX f32 reference mirroring the PyTorch forward pass exactly."""
    N, C, W = x.shape
    F, _, K = wconv.shape
    T = W - K + 1
    hi = jax.lax.Precision.HIGHEST
    cols = jnp.stack([x[:, :, j:j + T] for j in range(K)], axis=-1)  # (N,C,T,K)
    y = jnp.einsum('nctk,fck->nft', cols, wconv,
                   precision=hi) + bconv[None, :, None]
    y = jnp.maximum(y, 0.0)
    flat = y.reshape(N, 1, F * T)                    # .view(N, 1, -1)
    pooled = flat.reshape(N, T, F).mean(axis=-1)     # AvgPool1d(F) + squeeze
    z = jnp.dot(pooled, wlin.T, precision=hi) + blin
    return jax.nn.log_softmax(z, axis=1)             # nn.LogSoftmax() on 2-D


if __name__ == "__main__":
    # ToMnet(input_shape=(13, 4, 3), output_shape=6, feature_planes=8,
    #        character_embedding_dim=5)
    #   -> Conv1d(in=3+5=8, out=8, k=4), AvgPool1d(8), Linear(13, 6), LogSoftmax
    I0, Kk, C_state = 13, 4, 3
    emb, F, O = 5, 8, 6
    C = C_state + emb                 # 8 channels
    W = I0 + Kk - 1                   # 16; conv output width == 13 == Linear in
    N = 64                            # amortizes fixed cost; grid=(2,) @ tile 32

    x = jax.random.normal(jax.random.PRNGKey(0), (N, C, W), dtype=jnp.float32)

    kp = jax.random.PRNGKey(42)
    k1, k2, k3, k4 = jax.random.split(kp, 4)
    wconv = jax.random.uniform(k1, (F, C, Kk), jnp.float32, -0.5, 0.5)
    bconv = jax.random.uniform(k2, (F,), jnp.float32, -0.5, 0.5)
    wlin = jax.random.uniform(k3, (O, I0), jnp.float32, -0.5, 0.5)
    blin = jax.random.uniform(k4, (O,), jnp.float32, -0.5, 0.5)

    # One-time build (all host-side preprocessing happens here, not per call).
    tomnet_forward = build_tomnet_forward(wconv, bconv, wlin, blin, n_tile=32)

    out = jax.block_until_ready(tomnet_forward(x))
    ref = reference(x, wconv, bconv, wlin, blin)
    # Operands/accumulation are f32; observed agreement is ~1e-5.  Tolerance
    # is kept conservative only to also cover TPU generations whose MXU
    # contraction default rounds f32 operands to bf16 internally.
    np.testing.assert_allclose(np.asarray(out), np.asarray(ref),
                               rtol=2e-2, atol=2e-2)
    print("KERNEL_OK")
</pallas_src>

<mosaic_0001>
module attributes {stable_mosaic.version = 11 : i64} {
  func.func @tomnet_kernel(%arg0: i32, %arg1: memref<32x128xf32, #tpu.memory_space<vmem>>, %arg2: memref<128x128xf32, #tpu.memory_space<vmem>>, %arg3: memref<2x128xf32, #tpu.memory_space<vmem>>, %arg4: memref<128x6xf32, #tpu.memory_space<vmem>>, %arg5: memref<32x6xf32, #tpu.memory_space<vmem>>) attributes {dimension_semantics = [#tpu.dimension_semantics<parallel>], iteration_bounds = array<i64: 2>, scalar_prefetch = 0 : i64, scratch_operands = 0 : i64, tpu.core_type = #tpu.core_type<tc>, window_params = [{transform_indices = @transform_0, window_bounds = array<i64: 32, 128>}, {pipeline_mode = #tpu.pipeline_mode<synchronous>, transform_indices = @transform_1, window_bounds = array<i64: 128, 128>}, {pipeline_mode = #tpu.pipeline_mode<synchronous>, transform_indices = @transform_2, window_bounds = array<i64: 2, 128>}, {pipeline_mode = #tpu.pipeline_mode<synchronous>, transform_indices = @transform_3, window_bounds = array<i64: 128, 6>}, {transform_indices = @transform_4, window_bounds = array<i64: 32, 6>}]} {
    %c0 = arith.constant 0 : index
    %c0_0 = arith.constant 0 : index
    %0 = vector.load %arg3[%c0, %c0_0] : memref<2x128xf32, #tpu.memory_space<vmem>>, vector<2x128xf32>
    %c0_1 = arith.constant 0 : index
    %c0_2 = arith.constant 0 : index
    %1 = vector.load %arg1[%c0_1, %c0_2] : memref<32x128xf32, #tpu.memory_space<vmem>>, vector<32x128xf32>
    %c0_3 = arith.constant 0 : index
    %c0_4 = arith.constant 0 : index
    %2 = vector.load %arg2[%c0_3, %c0_4] : memref<128x128xf32, #tpu.memory_space<vmem>>, vector<128x128xf32>
    %cst = arith.constant dense<0.000000e+00> : vector<32x128xf32>
    %3 = tpu.matmul %1, %2, %cst {dimension_numbers = #tpu.dot_dimension_numbers<[1], [0], [0], [1], [0, 0, 1, 1], [], []>} : vector<32x128xf32>, vector<128x128xf32>, vector<32x128xf32> -> vector<32x128xf32>
    %4 = vector.extract_strided_slice %0 {offsets = [0, 0], sizes = [1, 128], strides = [1, 1]} : vector<2x128xf32> to vector<1x128xf32>
    %5 = vector.broadcast %4 : vector<1x128xf32> to vector<32x128xf32>
    %6 = arith.addf %3, %5 : vector<32x128xf32>
    %cst_5 = arith.constant 0.000000e+00 : f32
    %7 = vector.broadcast %cst_5 : f32 to vector<32x128xf32>
    %8 = arith.maximumf %6, %7 : vector<32x128xf32>
    %c0_6 = arith.constant 0 : index
    %c0_7 = arith.constant 0 : index
    %9 = vector.load %arg4[%c0_6, %c0_7] : memref<128x6xf32, #tpu.memory_space<vmem>>, vector<128x6xf32>
    %cst_8 = arith.constant dense<0.000000e+00> : vector<32x6xf32>
    %10 = tpu.matmul %8, %9, %cst_8 {dimension_numbers = #tpu.dot_dimension_numbers<[1], [0], [0], [1], [0, 0, 1, 1], [], []>} : vector<32x128xf32>, vector<128x6xf32>, vector<32x6xf32> -> vector<32x6xf32>
    %11 = vector.extract_strided_slice %0 {offsets = [1, 0], sizes = [1, 6], strides = [1, 1]} : vector<2x128xf32> to vector<1x6xf32>
    %12 = vector.broadcast %11 : vector<1x6xf32> to vector<32x6xf32>
    %13 = arith.addf %10, %12 : vector<32x6xf32>
    %cst_9 = arith.constant dense<0xFF800000> : vector<32xf32>
    %14 = vector.multi_reduction <maximumf>, %13, %cst_9 [1] : vector<32x6xf32> to vector<32xf32>
    %15 = vector.shape_cast %14 : vector<32xf32> to vector<32x1xf32>
    %16 = vector.broadcast %15 : vector<32x1xf32> to vector<32x6xf32>
    %17 = arith.subf %13, %16 : vector<32x6xf32>
    %18 = math.exp %17 : vector<32x6xf32>
    %cst_10 = arith.constant dense<0.000000e+00> : vector<32xf32>
    %19 = vector.multi_reduction <add>, %18, %cst_10 [1] : vector<32x6xf32> to vector<32xf32>
    %20 = vector.shape_cast %19 : vector<32xf32> to vector<32x1xf32>
    %21 = math.log %20 : vector<32x1xf32>
    %22 = vector.broadcast %15 : vector<32x1xf32> to vector<32x6xf32>
    %23 = arith.subf %13, %22 : vector<32x6xf32>
    %24 = vector.broadcast %21 : vector<32x1xf32> to vector<32x6xf32>
    %25 = arith.subf %23, %24 : vector<32x6xf32>
    %c0_11 = arith.constant 0 : index
    %c0_12 = arith.constant 0 : index
    %26 = vector.load %arg5[%c0_11, %c0_12] : memref<32x6xf32, #tpu.memory_space<vmem>>, vector<32x6xf32>
    tpu.vector_store %arg5[%c0_11, %c0_12], %25 {strides = array<i32>} : memref<32x6xf32, #tpu.memory_space<vmem>>, vector<32x6xf32>,
    return
  }
  func.func @transform_0(%arg0: i32) -> (i32, i32) {
    %c0_i32 = arith.constant 0 : i32
    %c0_i32_0 = arith.constant 0 : i32
    return %arg0, %c0_i32 : i32, i32
  }
  func.func @transform_1(%arg0: i32) -> (i32, i32) {
    %c0_i32 = arith.constant 0 : i32
    %c0_i32_0 = arith.constant 0 : i32
    %c0_i32_1 = arith.constant 0 : i32
    return %c0_i32, %c0_i32_0 : i32, i32
  }
  func.func @transform_2(%arg0: i32) -> (i32, i32) {
    %c0_i32 = arith.constant 0 : i32
    %c0_i32_0 = arith.constant 0 : i32
    %c0_i32_1 = arith.constant 0 : i32
    return %c0_i32, %c0_i32_0 : i32, i32
  }
  func.func @transform_3(%arg0: i32) -> (i32, i32) {
    %c0_i32 = arith.constant 0 : i32
    %c0_i32_0 = arith.constant 0 : i32
    %c0_i32_1 = arith.constant 0 : i32
    return %c0_i32, %c0_i32_0 : i32, i32
  }
  func.func @transform_4(%arg0: i32) -> (i32, i32) {
    %c0_i32 = arith.constant 0 : i32
    %c0_i32_0 = arith.constant 0 : i32
    return %arg0, %c0_i32 : i32, i32
  }
}

</mosaic_0001>

<bundles_post_ra>
// kernel: forward.1
= control target key start
LH: loop header
LB: loop body
LE: loop exit
PB: predicated region body
PF: predicated region fallthrough
CT: control target
= control target key end

     0   :  { %9 = vsyncpa [#allocation3], 0  ;;  %s854_s15 = smov 0   ;;  %s989_s0 = inlined_call_operand.vmem [shape: f32[64,128], index: 0, kind: input, shape index: {}]   ;;  %s990_s1 = inlined_call_operand.hbm [shape: f32[128,128], index: 1, kind: input, shape index: {}]   ;;  %s991_s2 = inlined_call_operand.vmem [shape: f32[2,128], index: 2, kind: input, shape index: {}]   ;;  %s992_s3 = inlined_call_operand.vmem [shape: f32[128,6], index: 3, kind: input, shape index: {}]   ;;  %s993_s4 = inlined_call_operand.vmem [shape: f32[64,6], index: 4, kind: output, shape index: {}]  }
   0x1 LB: > { %s556_s16 = sadd.s32 4294967295, %s824_s15   ;;  %p558_p0 = scmp.ge.s32.totalorder %s824_s15, 1  ;;  %s824_s15 = sphi %s854_s15, %s15_s15  }
   0x2   : > { %p135_p1 = scmp.lt.s32.totalorder %s824_s15, 3  ;;  %s826_s17 = smov [#allocation2]  }
   0x3   : > { %s147_s18 = sshll.u32 %s826_s17, 4  ;;  %p868_p3 = scmp.eq.s32.totalorder %s556_s16, 0  ;;  %s148_s18 = int_to_ptr.vmem [resolvable:$true] %s147_s18 }
   0x4   : > { %p862_p2 = pnand %p558_p0, %p135_p1  ;;  %s786_s24 = scalar_lea.hbm %s990_s1, 2048 }
   0x5   : > { %s998_s20 = scalar_select %p868_p3, 1, 0 }
   0x6   : > { %s997_s19 = scalar_select %p862_p2, 1, 0 }
   0x7   : > { %p753_p4 = pneg %p862_p2  ;;  %p787_p6 = scmp.ne.s32.totalorder %s990_s1, %s786_s24 }
   0x8   : > { %p793_p10 = scmp.lt.u32.totalorder %s786_s24, %s990_s1 }
   0x9   : > { %p876_p5 = pnand %p868_p3, %p753_p4 }
   0xb   : > { %p788_p7 = pneg %p876_p5 }
   0xd   : > { %p789_p8 = pnand %p788_p7, %p787_p6 }
   0xf   : > { %p790_p9 = pneg %p789_p8 }
  0x11   : > { %p795_p11 = pnand %p793_p10, %p790_p9 }
  0x13   : > { %798 = shalt.err (!%p795_p11)
}
  0x14   : > { %s799_s29 = scalar_lea.vmem %s148_s18, 2048  ;;  %p807_p1 = scmp.lt.s32.totalorder %s148_s18, %s148_s18 }
  0x15   : > { %p800_p12 = scmp.ne.s32.totalorder %s148_s18, %s799_s29  ;;  %p808_p4 = scmp.lt.s32.totalorder %s799_s29, %s799_s29 }
  0x17   : > { %p802_p13 = pnand %p800_p12, %p788_p7  ;;  %p809_p3 = por %p808_p4, %p807_p1 }
  0x19   : > { %p803_p0 = pneg %p802_p13 }
  0x1b   : > { %p810_p2 = pnand %p809_p3, %p803_p0 }
  0x1d   : > { %813 = shalt.err (!%p810_p2)
}
  0x1e   : > { %s827_s30 = smov 128   ;;  %s828_s5 = smov 8  }
  0x1f   : > { %756 = dma.hbm_to_vmem [thread:$0]  (!%p876_p5), %s990_s1, 2048, %s148_s18, [#allocation3], %s827_s30, %s827_s30, %s828_s5  }
  0x20   : > { %p1000_p6 = scmp.ne.s32.totalorder %s997_s19, 0 }
  0x21   : > { %p1001_p8 = scmp.ne.s32.totalorder (!%p1000_p6), %s998_s20, 0 }
  0x22   : > { %178 = sbr.rel (%p1000_p6) target bundleno = 836 (0x344), region = 36 }
  0x29   : > { %819 = dma.done.wait (%p1001_p8), [#allocation3], 2048  }
  0x2a   : > { %821 = vsyncadd (%p1001_p8), [#allocation3], 4294965248  ;;  %s563_s8 = sshll.u32 %s556_s16, 2  ;;  %v221_v0 = vld [vmem:[#allocation2] sm:$0xff]  ;;  %v222_v1 = vld [vmem:[#allocation2 + $0x8] sm:$0xff]  ;;  %v237_v52 = vlaneseq  ;;  %vm435_vm0 = vcmask 48128  }
  0x2b   : > { %p205_p2 = scmp.lt.s32.totalorder %s563_s8, 7  ;;  %v223_v2 = vld [vmem:[#allocation2 + $0x10] sm:$0xff]  ;;  %v685_v3 = vpack.c.bf16 %v222_v1, %v221_v0  ;;  %v224_v4 = vld [vmem:[#allocation2 + $0x18] sm:$0xff]  ;;  %v225_v6 = vld [vmem:[#allocation2 + $0x20] sm:$0xff] }
  0x2c   : > { %v689_v5 = vpack.c.bf16 %v224_v4, %v223_v2  ;;  %v226_v7 = vld [vmem:[#allocation2 + $0x28] sm:$0xff]  ;;  %v227_v10 = vld [vmem:[#allocation2 + $0x30] sm:$0xff]  ;;  %v228_v11 = vld [vmem:[#allocation2 + $0x38] sm:$0xff]  ;;  %v238_v53 = vshrl.u32 %v237_v52, 7 }
  0x2d   : > { %s1003_s8 = smov (!%p205_p2, %s563_s8), 7  ;;  %686 = vmatprep.subr.bf16.mxu0 %v685_v3  ;;  %v693_v8 = vpack.c.bf16 %v226_v7, %v225_v6  ;;  %v330_v12 = vld [vmem:[%s992_s3] sm:$0xff]  ;;  %v331_v13 = vld [vmem:[%s992_s3 + $0x8] sm:$0xff]  ;;  %v332_v14 = vld [vmem:[%s992_s3 + $0x10] sm:$0xff]  ;;  %v697_v18 = vpack.c.bf16 %v228_v11, %v227_v10 }
  0x2e   : > { %s564_s9 = sshll.u32 %s1003_s8, 3  ;;  %688 = vmatpush3.bf16.msra.mxu0 %v685_v3  ;;  %v333_v15 = vld [vmem:[%s992_s3 + $0x18] sm:$0xff]  ;;  %v717_v16 = vpack.c.bf16 %v331_v13, %v330_v12  ;;  %v334_v19 = vld [vmem:[%s992_s3 + $0x20] sm:$0xff]  ;;  %v335_v20 = vld [vmem:[%s992_s3 + $0x28] sm:$0xff]  ;;  %v239_v54 = vsub.s32 0, %v238_v53 }
  0x2f   : > { %s912_s12 = scalar_lea.vmem %s989_s0, %s564_s9  ;;  %690 = vmatprep.subr.bf16.mxu0 %v689_v5  ;;  %v721_v17 = vpack.c.bf16 %v333_v15, %v332_v14  ;;  %v229_v21 = vld [vmem:[#allocation2 + $0x40] sm:$0xff]  ;;  %v230_v22 = vld [vmem:[#allocation2 + $0x48] sm:$0xff]  ;;  %v725_v23 = vpack.c.bf16 %v335_v20, %v334_v19  ;;  %v336_v25 = vld [vmem:[%s992_s3 + $0x30] sm:$0xff]  ;;  %s214_s27 = scalar_lea.vmem %s993_s4, %s564_s9 }
  0x30   : > { %v217_v9 = vld [vmem:[%s912_s12] sm:$0xff]  ;;  %718 = vmatprep.subr.bf16.mxu1 %v717_v16  ;;  %v701_v24 = vpack.c.bf16 %v230_v22, %v229_v21  ;;  %v337_v26 = vld [vmem:[%s992_s3 + $0x38] sm:$0xff]  ;;  %v231_v27 = vld [vmem:[#allocation2 + $0x50] sm:$0xff] }
  0x31   : > { %641 = vmatprep.mubr.f32.mxu0 %v217_v9  ;;  %720 = vmatpush3.bf16.msra.mxu1 %v717_v16  ;;  %v232_v28 = vld [vmem:[#allocation2 + $0x58] sm:$0xff]  ;;  %v729_v29 = vpack.c.bf16 %v337_v26, %v336_v25  ;;  %v338_v31 = vld [vmem:[%s992_s3 + $0x40] sm:$0xff]  ;;  %v339_v32 = vld [vmem:[%s992_s3 + $0x48] sm:$0xff] }
  0x32   : > { %692 = vmatpush3.bf16.msra.mxu0 %v689_v5  ;;  %722 = vmatprep.subr.bf16.mxu1 %v721_v17  ;;  %v705_v30 = vpack.c.bf16 %v232_v28, %v231_v27  ;;  %v233_v33 = vld [vmem:[#allocation2 + $0x60] sm:$0xff]  ;;  %v234_v34 = vld [vmem:[#allocation2 + $0x68] sm:$0xff]  ;;  %v733_v35 = vpack.c.bf16 %v339_v32, %v338_v31  ;;  %v340_v37 = vld [vmem:[%s992_s3 + $0x50] sm:$0xff]  ;;  %v348_v5 = vsub.s32 1, %v238_v53 }
  0x33   : > { %694 = vmatprep.subr.bf16.mxu0 %v693_v8  ;;  %v709_v36 = vpack.c.bf16 %v234_v34, %v233_v33  ;;  %v341_v38 = vld [vmem:[%s992_s3 + $0x58] sm:$0xff]  ;;  %v235_v39 = vld [vmem:[#allocation2 + $0x70] sm:$0xff]  ;;  %v342_v43 = vld [vmem:[%s992_s3 + $0x60] sm:$0xff] }
  0x34   : > { %v236_v40 = vld [vmem:[#allocation2 + $0x78] sm:$0xff]  ;;  %v737_v41 = vpack.c.bf16 %v341_v38, %v340_v37  ;;  %v343_v44 = vld [vmem:[%s992_s3 + $0x68] sm:$0xff]  ;;  %v219_v47 = vld [vmem:[%s912_s12 + $0x10] sm:$0xff] }
  0x35   : > { %724 = vmatpush3.bf16.msra.mxu1 %v721_v17  ;;  %v713_v42 = vpack.c.bf16 %v236_v40, %v235_v39  ;;  %v741_v45 = vpack.c.bf16 %v343_v44, %v342_v43  ;;  %v218_v46 = vld [vmem:[%s912_s12 + $0x8] sm:$0xff]  ;;  %v220_v48 = vld [vmem:[%s912_s12 + $0x18] sm:$0xff]  ;;  %v344_v49 = vld [vmem:[%s992_s3 + $0x70] sm:$0xff] }
  0x36   : > { %696 = vmatpush3.bf16.msra.mxu0 %v693_v8  ;;  %726 = vmatprep.subr.bf16.mxu1 %v725_v23  ;;  %v345_v50 = vld [vmem:[%s992_s3 + $0x78] sm:$0xff]  ;;  %v216_v55 = vld [vmem:[%s991_s2] sm:$0x3] }
  0x37   : > { %698 = vmatprep.subr.bf16.mxu0 %v697_v18  ;;  %v745_v51 = vpack.c.bf16 %v345_v50, %v344_v49  ;;  %v240_v56 = vrot.slane %v216_v55, %v239_v54  ;;  %v349_v6 = vrot.slane %v216_v55, %v348_v5 }
  0x39   : > { %728 = vmatpush3.bf16.msra.mxu1 %v725_v23 }
  0x3a   : > { %700 = vmatpush3.bf16.msra.mxu0 %v697_v18  ;;  %730 = vmatprep.subr.bf16.mxu1 %v729_v29 }
  0x3b   : > { %702 = vmatprep.subr.bf16.mxu0 %v701_v24 }
  0x3d   : > { %732 = vmatpush3.bf16.msra.mxu1 %v729_v29 }
  0x3e   : > { %704 = vmatpush3.bf16.msra.mxu0 %v701_v24  ;;  %734 = vmatprep.subr.bf16.mxu1 %v733_v35 }
  0x3f   : > { %706 = vmatprep.subr.bf16.mxu0 %v705_v30 }
  0x41   : > { %736 = vmatpush3.bf16.msra.mxu1 %v733_v35 }
  0x42   : > { %708 = vmatpush3.bf16.msra.mxu0 %v705_v30  ;;  %738 = vmatprep.subr.bf16.mxu1 %v737_v41 }
  0x43   : > { %710 = vmatprep.subr.bf16.mxu0 %v709_v36 }
  0x45   : > { %740 = vmatpush3.bf16.msra.mxu1 %v737_v41 }
  0x46   : > { %712 = vmatpush3.bf16.msra.mxu0 %v709_v36  ;;  %742 = vmatprep.subr.bf16.mxu1 %v741_v45 }
  0x47   : > { %714 = vmatprep.subr.bf16.mxu0 %v713_v42 }
  0x49   : > { %744 = vmatpush3.bf16.msra.mxu1 %v741_v45 }
  0x4a   : > { %716 = vmatpush3.bf16.msra.mxu0 %v713_v42  ;;  %746 = vmatprep.subr.bf16.mxu1 %v745_v51 }
  0x4d   : > { %642 = vmatmul.mubr.f32.vlgmr.msra.gmra.mrb[0].mxu0 %v218_v46  ;;  %748 = vmatpush3.bf16.msra.mxu1 %v745_v51 }
  0x4e   : > { %644 = vmatprep.mubr.f32.mxu0 %v219_v47 }
  0x51   : > { %645 = vmatmul.mubr.f32.gmra.mrb[2].mxu0 %v220_v48 }
 0x120   : > { %v643_v57 = vpop.f32.mrb[0].mxu0 }
 0x121   : > { %v313_v58 = vadd.f32 %v643_v57, %v240_v56  ;;  %v307_v59 = vpop.f32.mrb[1].mxu0 }
 0x122   : > { %v308_v60 = vadd.f32 %v307_v59, %v240_v56 }
 0x123   : > { %v327_v63 = vmax.f32 %v313_v58, 0.0 }
 0x124   : > { %v646_v61 = vpop.f32.mrb[2].mxu0  ;;  %v326_v62 = vmax.f32 %v308_v60, 0.0 }
 0x125   : > { %v323_v0 = vadd.f32 %v646_v61, %v240_v56  ;;  %v317_v1 = vpop.f32.mrb[3].mxu0 }
 0x126   : > { %v318_v2 = vadd.f32 %v317_v1, %v240_v56  ;;  %679 = vmatprep.mubr.f32.mxu1 %v326_v62 }
 0x127   : > { %680 = vmatmul.mubr.f32.vlgmr.msra.gmra.mrb[0].mxu1 %v327_v63  ;;  %v329_v4 = vmax.f32 %v323_v0, 0.0 }
 0x128   : > { %v328_v3 = vmax.f32 %v318_v2, 0.0 }
 0x12a   : > { %682 = vmatprep.mubr.f32.mxu1 %v328_v3 }
 0x12b   : > { %683 = vmatmul.mubr.f32.gmra.mrb[2].mxu1 %v329_v4 }
 0x1fa   : > { %v681_v7 = vpop.f32.mrb[0].mxu1 }
 0x1fb   : > { %v416_v8 = vpop.f32.mrb[1].mxu1  ;;  %v422_v10 = vadd.f32 %v681_v7, %v349_v6 }
 0x1fc   : > { %v417_v9 = vadd.f32 %v416_v8, %v349_v6 }
 0x1fd   : > { %v439_v17 = vsel %vm435_vm0, %v422_v10, -inf }
 0x1fe   : > { %v684_v11 = vpop.f32.mrb[2].mxu1  ;;  %v436_v12 = vsel %vm435_vm0, %v417_v9, -inf }
 0x1ff   : > { %v426_v13 = vpop.f32.mrb[3].mxu1  ;;  %437 = vmax.xlane.f32.xlu0 %v436_v12  ;;  %v432_v15 = vadd.f32 %v684_v11, %v349_v6 }
 0x200   : > { %v427_v14 = vadd.f32 %v426_v13, %v349_v6 }
 0x201   : > { %v445_v18 = vsel %vm435_vm0, %v432_v15, -inf }
 0x202   : > { %v442_v16 = vsel %vm435_vm0, %v427_v14, -inf }
 0x203   : > { %443 = vmax.xlane.f32.xlu1 %v442_v16  ;;  %440 = vmax.xlane.f32.xlu0 %v439_v17 }
 0x207   : > { %446 = vmax.xlane.f32.xlu1 %v445_v18 }
 0x28c   : > { %v438_v19 = vpop.xlane.xlu0 %437 }
 0x28d   : > { %v448_v20 = vsub.f32 %v417_v9, %v438_v19 }
 0x28f   : > { %v452_v21 = vmul.f32 1.442695, %v448_v20 }
 0x290   : > { %v444_v22 = vpop.xlane.xlu1 %443  ;;  %v441_v23 = vpop.xlane.xlu0 %440 }
 0x291   : > { %770 = vpow2.f32 %v452_v21  ;;  %v450_v24 = vsub.f32 %v427_v14, %v444_v22  ;;  %v449_v25 = vsub.f32 %v422_v10, %v441_v23 }
 0x293   : > { %v456_v26 = vmul.f32 1.442695, %v450_v24  ;;  %v454_v27 = vmul.f32 1.442695, %v449_v25 }
 0x294   : > { %v447_v28 = vpop.xlane.xlu1 %446 }
 0x295   : > { %772 = vpow2.f32 %v456_v26  ;;  %v451_v29 = vsub.f32 %v432_v15, %v447_v28 }
 0x296   : > { %774 = vpow2.f32 %v454_v27 }
 0x297   : > { %v458_v30 = vmul.f32 1.442695, %v451_v29 }
 0x299   : > { %776 = vpow2.f32 %v458_v30 }
 0x29b   : > { %v771_v31 = vpop.eup %770 }
 0x29c   : > { %v460_v32 = vsel %vm435_vm0, %v771_v31, 0.0 }
 0x29d   : > { %461 = vadd.xlane.f32.xlu0 %v460_v32 }
 0x29f   : > { %v773_v33 = vpop.eup %772 }
 0x2a0   : > { %v775_v34 = vpop.eup %774  ;;  %v466_v35 = vsel %vm435_vm0, %v773_v33, 0.0 }
 0x2a1   : > { %467 = vadd.xlane.f32.xlu0 %v466_v35  ;;  %v463_v36 = vsel %vm435_vm0, %v775_v34, 0.0 }
 0x2a2   : > { %464 = vadd.xlane.f32.xlu1 %v463_v36 }
 0x2a3   : > { %v777_v37 = vpop.eup %776 }
 0x2a4   : > { %v469_v38 = vsel %vm435_vm0, %v777_v37, 0.0 }
 0x2a6   : > { %470 = vadd.xlane.f32.xlu1 %v469_v38 }
 0x32a   : > { %v462_v39 = vpop.xlane.xlu0 %461 }
 0x32b   : > { %778 = vlog2.f32 %v462_v39 }
 0x32e   : > { %v468_v40 = vpop.xlane.xlu0 %467 }
 0x32f   : > { %v465_v41 = vpop.xlane.xlu1 %464  ;;  %780 = vlog2.f32 %v468_v40 }
 0x330   : > { %782 = vlog2.f32 %v465_v41 }
 0x333   : > { %v471_v42 = vpop.xlane.xlu1 %470 }
 0x334   : > { %784 = vlog2.f32 %v471_v42 }
 0x335   : > { %v779_v43 = vpop.eup %778 }
 0x336   : > { %v473_v44 = vmul.f32 0.6931472, %v779_v43 }
 0x338   : > { %v480_v45 = vsub.f32 %v448_v20, %v473_v44 }
 0x339   : > { %v781_v46 = vpop.eup %780 }
 0x33a   : > { %v783_v47 = vpop.eup %782  ;;  %484 = vst.msk [vmem:[%s214_s27] sm:$0xff] %vm435_vm0, %v480_v45  ;;  %v477_v48 = vmul.f32 0.6931472, %v781_v46 }
 0x33b   : > { %v475_v49 = vmul.f32 0.6931472, %v783_v47 }
 0x33c   : > { %v482_v50 = vsub.f32 %v450_v24, %v477_v48 }
 0x33d   : > { %v481_v51 = vsub.f32 %v449_v25, %v475_v49 }
 0x33e   : > { %v785_v52 = vpop.eup %784  ;;  %486 = vst.msk [vmem:[%s214_s27 + $0x10] sm:$0xff] %vm435_vm0, %v482_v50 }
 0x33f   : > { %485 = vst.msk [vmem:[%s214_s27 + $0x8] sm:$0xff] %vm435_vm0, %v481_v51  ;;  %v479_v53 = vmul.f32 0.6931472, %v785_v52 }
 0x341   : > { %v483_v54 = vsub.f32 %v451_v29, %v479_v53 }
 0x343   : > { %487 = vst.msk [vmem:[%s214_s27 + $0x18] sm:$0xff] %vm435_vm0, %v483_v54 }
 0x344 PF: > { %s15_s15 = sadd.s32 1, %s824_s15  }
 0x345   : > { %p12_p3 = scmp.ge.s32.totalorder %s15_s15, 4  }
 0x347   :  { %14 = sbr.rel (!%p12_p3) target bundleno = 1 (0x1), region = 71 }
 0x34e   :  { %510 = vsyncpa [#allocation3], 1 }
 0x34f   :  { %512 = vsyncpa [#allocation3 + $0x1], 1 }

</bundles_post_ra>
